<compile_context>
chip_gen: v5e
topology: v5e:2x2
jax: 0.10.0
libtpu: 0.0.40
codegen_flags: <defaults>
</compile_context>

<pallas_src>
import jax
import jax.numpy as jnp
from jax import lax
from jax.experimental import pallas as pl
from jax.experimental.pallas import tpu as pltpu

BN_EPS = 1e-3
MXU_DTYPE = jnp.bfloat16     # MXU operand dtype (f32 accumulation)
STORE_DTYPE = jnp.bfloat16   # conv intermediate storage dtype (stats stay exact f32)


def _round_up(x, m):
    return (x + m - 1) // m * m


def _vmem_limit():
    """Per-generation scoped VMEM limit: <=48 MiB (safe on v7x's 64 MiB, raises
    the 32 MiB default on v5e/v6e's 128 MiB parts)."""
    try:
        cap = int(pltpu.get_tpu_info().vmem_capacity_bytes)
    except Exception:
        cap = 64 * 1024 * 1024
    return min(48 * 1024 * 1024, (cap * 3) // 4)


VMEM_LIMIT = _vmem_limit()


def _pick_lane_tile(m_pad):
    """m_pad is a multiple of 128; largest 128-multiple tile <= 1024 dividing it."""
    t = min(1024, m_pad)
    while t >= 128:
        if m_pad % t == 0:
            return t
        t -= 128
    return 128


# ---------------------------------------------------------------------------
# Kernel 1: stride-2 Conv3d as a single im2col matmul + fused BN statistics.
#   grid = (N, row_tiles), both "parallel".
#   x block : (K_pad, TR)        bf16  (K = 27*Cin taps, TR flattened spatial lanes)
#   w block : (Cout_mxu, K_pad)  bf16  (grid-invariant -> VMEM resident)
#   outputs : conv tile (Cout_st, TR) bf16 ; per-block sum / sumsq (Cout_st, 1) f32
# ---------------------------------------------------------------------------
def _conv_stats_kernel(x_ref, w_ref, o_ref, s1_ref, s2_ref):
    acc = jnp.dot(w_ref[...], x_ref[...],
                  preferred_element_type=jnp.float32)      # (Cout_mxu, TR) f32
    acc = acc[:o_ref.shape[0], :]                          # (Cout_st, TR)
    o_ref[...] = acc.astype(o_ref.dtype)                   # lane-dense bf16 store
    # Exact BN statistics from the f32 accumulator; zero-padded lanes/rows add 0.
    s1_ref[...] = jnp.sum(acc, axis=1, keepdims=True)
    s2_ref[...] = jnp.sum(acc * acc, axis=1, keepdims=True)


# ---------------------------------------------------------------------------
# Kernel 2: BatchNorm apply (precomputed per-channel scale/shift) + ReLU,
#           written directly in the final (N, Cout, Do*Ho*Wo) layout.
# ---------------------------------------------------------------------------
def _bn_relu_kernel(y_ref, scale_ref, shift_ref, o_ref):
    y = y_ref[:o_ref.shape[0], :].astype(jnp.float32)
    o_ref[...] = jnp.maximum(y * scale_ref[...] + shift_ref[...], 0.0)


def downsampler_forward(x, w, gamma, beta):
    """DownSamplerA forward. x: (N,Cin,D,H,W) f32; w: (Cout,Cin,3,3,3) f32."""
    N, Cin, D, H, W = x.shape
    Cout = w.shape[0]
    Do, Ho, Wo = (D + 1) // 2, (H + 1) // 2, (W + 1) // 2
    DHW = Do * Ho * Wo
    K = 27 * Cin

    K_pad = _round_up(K, 16)          # bf16 sublane granularity for the contraction
    Cout_mxu = _round_up(Cout, 16)    # bf16 MXU-lhs row padding (no relayout)
    Cout_st = _round_up(Cout, 8)      # intermediate / stats rows
    DHWp = _round_up(DHW, 128)        # lane-dense flattened spatial axis
    TR = _pick_lane_tile(DHWp)
    RB = DHWp // TR

    # ---- JAX-side im2col over all 27 taps (stride-2 gather => ~27/8 of the
    # input element count, ~1.7x the f32 input bytes in bf16).  K ordering is
    # (kd, kh, kw, cin); the trailing reshape is layout-free (no big transpose).
    xp = jnp.pad(x, ((0, 0), (0, 0), (1, 1), (1, 1), (1, 1))).astype(MXU_DTYPE)
    taps = [xp[:, :, kd:kd + 2 * Do:2, kh:kh + 2 * Ho:2, kw:kw + 2 * Wo:2]
            for kd in range(3) for kh in range(3) for kw in range(3)]
    xcol = jnp.stack(taps, axis=1)                 # (N, 27, Cin, Do, Ho, Wo)
    xcol = xcol.reshape(N, K, DHW)                 # layout-free merge
    if K_pad != K or DHWp != DHW:
        xcol = jnp.pad(xcol, ((0, 0), (0, K_pad - K), (0, DHWp - DHW)))

    # Weight: (Cout, Cin, kd, kh, kw) -> (Cout_mxu, K_pad) with K = (kd, kh, kw, cin).
    wk = w.transpose(0, 2, 3, 4, 1).reshape(Cout, K)
    wk = jnp.pad(wk, ((0, Cout_mxu - Cout), (0, K_pad - K))).astype(MXU_DTYPE)

    flops1 = 2 * N * DHW * K * Cout
    bytes1 = (N * K_pad * DHWp * 2 + Cout_mxu * K_pad * 2
              + N * Cout_st * DHWp * 2 + 2 * N * RB * Cout_st * 4)

    conv_y, psum, psq = pl.pallas_call(
        _conv_stats_kernel,
        grid=(N, RB),
        in_specs=[
            pl.BlockSpec((None, K_pad, TR), lambda n, r: (n, 0, r)),
            pl.BlockSpec((Cout_mxu, K_pad), lambda n, r: (0, 0)),   # VMEM-resident
        ],
        out_specs=[
            pl.BlockSpec((None, Cout_st, TR), lambda n, r: (n, 0, r)),
            pl.BlockSpec((None, None, Cout_st, 1), lambda n, r: (n, r, 0, 0)),
            pl.BlockSpec((None, None, Cout_st, 1), lambda n, r: (n, r, 0, 0)),
        ],
        out_shape=[
            jax.ShapeDtypeStruct((N, Cout_st, DHWp), STORE_DTYPE),
            jax.ShapeDtypeStruct((N, RB, Cout_st, 1), jnp.float32),
            jax.ShapeDtypeStruct((N, RB, Cout_st, 1), jnp.float32),
        ],
        compiler_params=pltpu.CompilerParams(
            dimension_semantics=("parallel", "parallel"),
            vmem_limit_bytes=VMEM_LIMIT),
        cost_estimate=pl.CostEstimate(flops=flops1, transcendentals=0,
                                      bytes_accessed=bytes1),
    )(xcol, wk)

    # ---- Global BatchNorm statistics (training mode, biased variance) in f32.
    # Padded lanes/rows contributed 0 to the sums; divide by the true count.
    # NOTE: E[x^2]-E[x]^2 in f32 — fine at these scales (guarded with max(.,0)).
    m_total = N * DHW
    ssum = jnp.sum(psum, axis=(0, 1))[:Cout, 0]
    ssq = jnp.sum(psq, axis=(0, 1))[:Cout, 0]
    mean = ssum / m_total
    var = jnp.maximum(ssq / m_total - mean * mean, 0.0)
    scale = gamma * lax.rsqrt(var + BN_EPS)
    shift = beta - mean * scale
    scale2 = scale.reshape(Cout, 1).astype(jnp.float32)
    shift2 = shift.reshape(Cout, 1).astype(jnp.float32)
    # TODO(synk): BatchNorm running_mean/running_var update (momentum=0.95) is
    # stateful training bookkeeping and does not affect the forward output.

    out_flat = pl.pallas_call(
        _bn_relu_kernel,
        grid=(N, RB),
        in_specs=[
            pl.BlockSpec((None, Cout_st, TR), lambda n, r: (n, 0, r)),
            pl.BlockSpec((Cout, 1), lambda n, r: (0, 0)),
            pl.BlockSpec((Cout, 1), lambda n, r: (0, 0)),
        ],
        out_specs=pl.BlockSpec((None, Cout, TR), lambda n, r: (n, 0, r)),
        out_shape=jax.ShapeDtypeStruct((N, Cout, DHWp), jnp.float32),
        compiler_params=pltpu.CompilerParams(
            dimension_semantics=("parallel", "parallel"),
            vmem_limit_bytes=VMEM_LIMIT),
        cost_estimate=pl.CostEstimate(
            flops=2 * N * DHWp * Cout, transcendentals=0,
            bytes_accessed=N * Cout_st * DHWp * 2 + N * Cout * DHWp * 4),
    )(conv_y, scale2, shift2)

    # Final layout written by the kernel; only a free reshape remains
    # (a cheap slice only when DHW needed lane padding).
    if DHWp != DHW:
        out_flat = out_flat[..., :DHW]
    return out_flat.reshape(N, Cout, Do, Ho, Wo)


# ---------------------------------------------------------------------------
# Pure-JAX reference: same bf16 MXU operand precision, f32 accumulation,
# stats from f32, bf16 rounding of the normalized value (mirrors the kernel).
# ---------------------------------------------------------------------------
def _reference(x, w, gamma, beta):
    y = lax.conv_general_dilated(
        x.astype(MXU_DTYPE), w.astype(MXU_DTYPE),
        window_strides=(2, 2, 2), padding=((1, 1), (1, 1), (1, 1)),
        dimension_numbers=("NCDHW", "OIDHW", "NCDHW"),
        preferred_element_type=jnp.float32)
    mean = jnp.mean(y, axis=(0, 2, 3, 4), keepdims=True)
    var = jnp.mean((y - mean) ** 2, axis=(0, 2, 3, 4), keepdims=True)
    scale = gamma.reshape(1, -1, 1, 1, 1) * lax.rsqrt(var + BN_EPS)
    shift = beta.reshape(1, -1, 1, 1, 1) - mean * scale
    yq = y.astype(STORE_DTYPE).astype(jnp.float32)   # mirror bf16 intermediate
    return jnp.maximum(yq * scale + shift, 0.0)


if __name__ == "__main__":
    key = jax.random.PRNGKey(0)
    k1, k2, k3, k4 = jax.random.split(key, 4)

    N, Cin, Cout, D, H, W = 2, 4, 8, 16, 16, 16
    x = jax.random.normal(k1, (N, Cin, D, H, W), jnp.float32)
    w = 0.1 * jax.random.normal(k2, (Cout, Cin, 3, 3, 3), jnp.float32)
    gamma = 1.0 + 0.1 * jax.random.normal(k3, (Cout,), jnp.float32)
    beta = 0.1 * jax.random.normal(k4, (Cout,), jnp.float32)

    out = jax.block_until_ready(jax.jit(downsampler_forward)(x, w, gamma, beta))
    Do, Ho, Wo = (D + 1) // 2, (H + 1) // 2, (W + 1) // 2
    assert out.shape == (N, Cout, Do, Ho, Wo), out.shape

    ref = _reference(x, w, gamma, beta)
    max_err = float(jnp.max(jnp.abs(out - ref)))
    mean_err = float(jnp.mean(jnp.abs(out - ref)))
    # Tolerances account for the bf16 conv intermediate (an occasional 1-ulp
    # rounding flip vs. XLA's conv); BN statistics themselves are exact f32.
    assert max_err < 5e-2, (max_err, mean_err)
    assert mean_err < 5e-3, (max_err, mean_err)
    print("KERNEL_OK")
</pallas_src>

<mosaic_0001>
module attributes {stable_mosaic.version = 11 : i64} {
  func.func @_conv_stats_kernel(%arg0: i32, %arg1: i32, %arg2: memref<1x112x512xbf16, #tpu.memory_space<vmem>>, %arg3: memref<16x112xbf16, #tpu.memory_space<vmem>>, %arg4: memref<1x8x512xbf16, #tpu.memory_space<vmem>>, %arg5: memref<1x1x8x1xf32, #tpu.memory_space<vmem>>, %arg6: memref<1x1x8x1xf32, #tpu.memory_space<vmem>>) attributes {dimension_semantics = [#tpu.dimension_semantics<parallel>, #tpu.dimension_semantics<parallel>], iteration_bounds = array<i64: 2, 1>, scalar_prefetch = 0 : i64, scratch_operands = 0 : i64, tpu.core_type = #tpu.core_type<tc>, window_params = [{transform_indices = @transform_0, window_bounds = array<i64: 1, 112, 512>}, {pipeline_mode = #tpu.pipeline_mode<synchronous>, transform_indices = @transform_1, window_bounds = array<i64: 16, 112>}, {transform_indices = @transform_2, window_bounds = array<i64: 1, 8, 512>}, {transform_indices = @transform_3, window_bounds = array<i64: 1, 1, 8, 1>}, {transform_indices = @transform_4, window_bounds = array<i64: 1, 1, 8, 1>}]} {
    %c0 = arith.constant 0 : index
    %c0_0 = arith.constant 0 : index
    %0 = vector.load %arg3[%c0, %c0_0] : memref<16x112xbf16, #tpu.memory_space<vmem>>, vector<16x112xbf16>
    %c0_1 = arith.constant 0 : index
    %c0_2 = arith.constant 0 : index
    %c0_3 = arith.constant 0 : index
    %1 = vector.load %arg2[%c0_1, %c0_2, %c0_3] : memref<1x112x512xbf16, #tpu.memory_space<vmem>>, vector<1x112x512xbf16>
    %2 = vector.shape_cast %1 : vector<1x112x512xbf16> to vector<112x512xbf16>
    %cst = arith.constant dense<0.000000e+00> : vector<16x512xf32>
    %3 = tpu.matmul %0, %2, %cst {dimension_numbers = #tpu.dot_dimension_numbers<[1], [0], [0], [1], [0, 0, 1, 1], [], []>} : vector<16x112xbf16>, vector<112x512xbf16>, vector<16x512xf32> -> vector<16x512xf32>
    %4 = vector.extract_strided_slice %3 {offsets = [0, 0], sizes = [8, 512], strides = [1, 1]} : vector<16x512xf32> to vector<8x512xf32>
    %5 = arith.truncf %4 : vector<8x512xf32> to vector<8x512xbf16>
    %c0_4 = arith.constant 0 : index
    %c0_5 = arith.constant 0 : index
    %c0_6 = arith.constant 0 : index
    %6 = vector.load %arg4[%c0_4, %c0_5, %c0_6] : memref<1x8x512xbf16, #tpu.memory_space<vmem>>, vector<1x8x512xbf16>
    %7 = vector.shape_cast %6 : vector<1x8x512xbf16> to vector<8x512xbf16>
    %8 = vector.shape_cast %5 : vector<8x512xbf16> to vector<1x8x512xbf16>
    tpu.vector_store %arg4[%c0_4, %c0_5, %c0_6], %8 {strides = array<i32>} : memref<1x8x512xbf16, #tpu.memory_space<vmem>>, vector<1x8x512xbf16>,
    %cst_7 = arith.constant dense<0.000000e+00> : vector<8xf32>
    %9 = vector.multi_reduction <add>, %4, %cst_7 [1] : vector<8x512xf32> to vector<8xf32>
    %10 = vector.shape_cast %9 : vector<8xf32> to vector<8x1xf32>
    %c0_8 = arith.constant 0 : index
    %c0_9 = arith.constant 0 : index
    %c0_10 = arith.constant 0 : index
    %c0_11 = arith.constant 0 : index
    %11 = vector.load %arg5[%c0_8, %c0_9, %c0_10, %c0_11] : memref<1x1x8x1xf32, #tpu.memory_space<vmem>>, vector<1x1x8x1xf32>
    %12 = vector.shape_cast %11 : vector<1x1x8x1xf32> to vector<8x1xf32>
    %13 = vector.shape_cast %10 : vector<8x1xf32> to vector<1x1x8x1xf32>
    tpu.vector_store %arg5[%c0_8, %c0_9, %c0_10, %c0_11], %13 {strides = array<i32>} : memref<1x1x8x1xf32, #tpu.memory_space<vmem>>, vector<1x1x8x1xf32>,
    %14 = arith.mulf %4, %4 : vector<8x512xf32>
    %cst_12 = arith.constant dense<0.000000e+00> : vector<8xf32>
    %15 = vector.multi_reduction <add>, %14, %cst_12 [1] : vector<8x512xf32> to vector<8xf32>
    %16 = vector.shape_cast %15 : vector<8xf32> to vector<8x1xf32>
    %c0_13 = arith.constant 0 : index
    %c0_14 = arith.constant 0 : index
    %c0_15 = arith.constant 0 : index
    %c0_16 = arith.constant 0 : index
    %17 = vector.load %arg6[%c0_13, %c0_14, %c0_15, %c0_16] : memref<1x1x8x1xf32, #tpu.memory_space<vmem>>, vector<1x1x8x1xf32>
    %18 = vector.shape_cast %17 : vector<1x1x8x1xf32> to vector<8x1xf32>
    %19 = vector.shape_cast %16 : vector<8x1xf32> to vector<1x1x8x1xf32>
    tpu.vector_store %arg6[%c0_13, %c0_14, %c0_15, %c0_16], %19 {strides = array<i32>} : memref<1x1x8x1xf32, #tpu.memory_space<vmem>>, vector<1x1x8x1xf32>,
    return
  }
  func.func @transform_0(%arg0: i32, %arg1: i32) -> (i32, i32, i32) {
    %c0_i32 = arith.constant 0 : i32
    %c0_i32_0 = arith.constant 0 : i32
    return %arg0, %c0_i32, %arg1 : i32, i32, i32
  }
  func.func @transform_1(%arg0: i32, %arg1: i32) -> (i32, i32) {
    %c0_i32 = arith.constant 0 : i32
    %c0_i32_0 = arith.constant 0 : i32
    %c0_i32_1 = arith.constant 0 : i32
    return %c0_i32, %c0_i32_0 : i32, i32
  }
  func.func @transform_2(%arg0: i32, %arg1: i32) -> (i32, i32, i32) {
    %c0_i32 = arith.constant 0 : i32
    %c0_i32_0 = arith.constant 0 : i32
    return %arg0, %c0_i32, %arg1 : i32, i32, i32
  }
  func.func @transform_3(%arg0: i32, %arg1: i32) -> (i32, i32, i32, i32) {
    %c0_i32 = arith.constant 0 : i32
    %c0_i32_0 = arith.constant 0 : i32
    %c0_i32_1 = arith.constant 0 : i32
    return %arg0, %arg1, %c0_i32, %c0_i32_0 : i32, i32, i32, i32
  }
  func.func @transform_4(%arg0: i32, %arg1: i32) -> (i32, i32, i32, i32) {
    %c0_i32 = arith.constant 0 : i32
    %c0_i32_0 = arith.constant 0 : i32
    %c0_i32_1 = arith.constant 0 : i32
    return %arg0, %arg1, %c0_i32, %c0_i32_0 : i32, i32, i32, i32
  }
}

module attributes {stable_mosaic.version = 11 : i64} {
  func.func @_bn_relu_kernel(%arg0: i32, %arg1: i32, %arg2: memref<1x8x512xbf16, #tpu.memory_space<vmem>>, %arg3: memref<8x1xf32, #tpu.memory_space<vmem>>, %arg4: memref<8x1xf32, #tpu.memory_space<vmem>>, %arg5: memref<1x8x512xf32, #tpu.memory_space<vmem>>) attributes {dimension_semantics = [#tpu.dimension_semantics<parallel>, #tpu.dimension_semantics<parallel>], iteration_bounds = array<i64: 2, 1>, scalar_prefetch = 0 : i64, scratch_operands = 0 : i64, tpu.core_type = #tpu.core_type<tc>, window_params = [{transform_indices = @transform_0, window_bounds = array<i64: 1, 8, 512>}, {pipeline_mode = #tpu.pipeline_mode<synchronous>, transform_indices = @transform_1, window_bounds = array<i64: 8, 1>}, {pipeline_mode = #tpu.pipeline_mode<synchronous>, transform_indices = @transform_2, window_bounds = array<i64: 8, 1>}, {transform_indices = @transform_3, window_bounds = array<i64: 1, 8, 512>}]} {
    %c0 = arith.constant 0 : index
    %c0_0 = arith.constant 0 : index
    %c0_1 = arith.constant 0 : index
    %0 = vector.load %arg2[%c0, %c0_0, %c0_1] : memref<1x8x512xbf16, #tpu.memory_space<vmem>>, vector<1x8x512xbf16>
    %1 = vector.shape_cast %0 : vector<1x8x512xbf16> to vector<8x512xbf16>
    %2 = arith.extf %1 : vector<8x512xbf16> to vector<8x512xf32>
    %c0_2 = arith.constant 0 : index
    %c0_3 = arith.constant 0 : index
    %3 = vector.load %arg3[%c0_2, %c0_3] : memref<8x1xf32, #tpu.memory_space<vmem>>, vector<8x1xf32>
    %4 = vector.broadcast %3 : vector<8x1xf32> to vector<8x512xf32>
    %5 = arith.mulf %2, %4 : vector<8x512xf32>
    %c0_4 = arith.constant 0 : index
    %c0_5 = arith.constant 0 : index
    %6 = vector.load %arg4[%c0_4, %c0_5] : memref<8x1xf32, #tpu.memory_space<vmem>>, vector<8x1xf32>
    %7 = vector.broadcast %6 : vector<8x1xf32> to vector<8x512xf32>
    %8 = arith.addf %5, %7 : vector<8x512xf32>
    %cst = arith.constant 0.000000e+00 : f32
    %9 = vector.broadcast %cst : f32 to vector<8x512xf32>
    %10 = arith.maximumf %8, %9 : vector<8x512xf32>
    %c0_6 = arith.constant 0 : index
    %c0_7 = arith.constant 0 : index
    %c0_8 = arith.constant 0 : index
    %11 = vector.load %arg5[%c0_6, %c0_7, %c0_8] : memref<1x8x512xf32, #tpu.memory_space<vmem>>, vector<1x8x512xf32>
    %12 = vector.shape_cast %11 : vector<1x8x512xf32> to vector<8x512xf32>
    %13 = vector.shape_cast %10 : vector<8x512xf32> to vector<1x8x512xf32>
    tpu.vector_store %arg5[%c0_6, %c0_7, %c0_8], %13 {strides = array<i32>} : memref<1x8x512xf32, #tpu.memory_space<vmem>>, vector<1x8x512xf32>,
    return
  }
  func.func @transform_0(%arg0: i32, %arg1: i32) -> (i32, i32, i32) {
    %c0_i32 = arith.constant 0 : i32
    %c0_i32_0 = arith.constant 0 : i32
    return %arg0, %c0_i32, %arg1 : i32, i32, i32
  }
  func.func @transform_1(%arg0: i32, %arg1: i32) -> (i32, i32) {
    %c0_i32 = arith.constant 0 : i32
    %c0_i32_0 = arith.constant 0 : i32
    %c0_i32_1 = arith.constant 0 : i32
    return %c0_i32, %c0_i32_0 : i32, i32
  }
  func.func @transform_2(%arg0: i32, %arg1: i32) -> (i32, i32) {
    %c0_i32 = arith.constant 0 : i32
    %c0_i32_0 = arith.constant 0 : i32
    %c0_i32_1 = arith.constant 0 : i32
    return %c0_i32, %c0_i32_0 : i32, i32
  }
  func.func @transform_3(%arg0: i32, %arg1: i32) -> (i32, i32, i32) {
    %c0_i32 = arith.constant 0 : i32
    %c0_i32_0 = arith.constant 0 : i32
    return %arg0, %c0_i32, %arg1 : i32, i32, i32
  }
}

</mosaic_0001>

<bundles_post_ra>
// kernel: downsampler_forward.3
= control target key start
LH: loop header
LB: loop body
LE: loop exit
PB: predicated region body
PF: predicated region fallthrough
CT: control target
= control target key end

     0   :  { %s415_s12 = smov 0   ;;  %s417_s13 = smov 0   ;;  %s454_s0 = inlined_call_operand.vmem [shape: bf16[2,8,512], index: 0, kind: input, shape index: {}]   ;;  %s455_s1 = inlined_call_operand.vmem [shape: f32[8,1], index: 1, kind: input, shape index: {}]   ;;  %s456_s2 = inlined_call_operand.vmem [shape: f32[8,1], index: 2, kind: input, shape index: {}]   ;;  %s457_s3 = inlined_call_operand.vmem [shape: f32[2,8,512], index: 3, kind: output, shape index: {}]  }
   0x1   :  { %s419_s14 = smov 0  }
   0x2 LB: > { %s25_s15 = sadd.s32 1, %s388_s13  ;;  %p335_p0 = scmp.ge.s32.totalorder %s392_s14, 1  ;;  %s392_s14 = sphi %s419_s14, %s13_s14   ;;  %s388_s13 = sphi %s417_s13, %s459_s13   ;;  %s384_s12 = sphi %s415_s12, %s458_s12  }
   0x3   : > { %p27_p1 = scmp.ge.s32.totalorder %s25_s15, 2  ;;  %p158_p2 = scmp.lt.s32.totalorder %s392_s14, 3 }
   0x5   : > { %s461_s15 = smov (%p27_p1, %s25_s15), 0  ;;  %p159_p3 = pnand %p335_p0, %p158_p2 }
   0x6   : > { %p191_p4 = scmp.lt.s32.totalorder (!%p159_p3), %s384_s12, 1 }
   0x7   : > { %162 = sbr.rel (%p159_p3) target bundleno = 145 (0x91), region = 32 }
   0xc   : > { %v216_v0 = vld [vmem:[%s455_s1] sm:$0xff]  ;;  %v394_v1 = vmov 0   ;;  %s463_s12 = smov (!%p191_p4, %s384_s12), 1 }
   0xd   : > { %369 = vset.pattern.permute.xlu0 %v394_v1  ;;  %v226_v2 = vld [vmem:[%s456_s2] sm:$0xff]  ;;  %s342_s20 = sshll.u32 %s463_s12, 4  ;;  %s343_s24 = sshll.u32 %s463_s12, 5 }
   0xe   : > { %219 = vperm.xlu0 %369, %v216_v0   ;;  %s198_s23 = scalar_lea.vmem %s454_s0, %s342_s20  ;;  %s208_s27 = scalar_lea.vmem %s457_s3, %s343_s24 }
   0xf   : > { %v210_v4 = vld [vmem:[%s198_s23] sm:$0xff]  ;;  %v211_v5 = vld [vmem:[%s198_s23 + $0x8] sm:$0xff] }
  0x10   : > { %v212_v6 = vunpack.c.l.bf16 %v210_v4  ;;  %v213_v7 = vunpack.c.h.bf16 %v210_v4  ;;  %v214_v8 = vunpack.c.l.bf16 %v211_v5  ;;  %v215_v9 = vunpack.c.h.bf16 %v211_v5 }
  0x16   : > { %229 = vperm.xlu0 %369, %v226_v2  }
  0x80   : > { %v220_v3 = vpop.permute.xlu0 %219 }
  0x81   : > { %v222_v10 = vmul.f32 %v220_v3, %v212_v6  ;;  %v223_v11 = vmul.f32 %v220_v3, %v213_v7  ;;  %v224_v12 = vmul.f32 %v220_v3, %v214_v8  ;;  %v225_v13 = vmul.f32 %v220_v3, %v215_v9 }
  0x88   : > { %v230_v14 = vpop.permute.xlu0 %229 }
  0x89   : > { %v232_v15 = vadd.f32 %v230_v14, %v222_v10  ;;  %v233_v16 = vadd.f32 %v230_v14, %v223_v11  ;;  %v234_v17 = vadd.f32 %v230_v14, %v224_v12  ;;  %v235_v18 = vadd.f32 %v230_v14, %v225_v13 }
  0x8b   : > { %v236_v19 = vmax.f32 %v232_v15, 0.0  ;;  %v237_v20 = vmax.f32 %v233_v16, 0.0  ;;  %v238_v21 = vmax.f32 %v234_v17, 0.0  ;;  %v239_v22 = vmax.f32 %v235_v18, 0.0 }
  0x8d   : > { %240 = vst [vmem:[%s208_s27] sm:$0xff] %v236_v19 }
  0x8e   : > { %241 = vst [vmem:[%s208_s27 + $0x8] sm:$0xff] %v237_v20 }
  0x8f   : > { %242 = vst [vmem:[%s208_s27 + $0x10] sm:$0xff] %v238_v21 }
  0x90   : > { %243 = vst [vmem:[%s208_s27 + $0x18] sm:$0xff] %v239_v22 }
  0x91 PF: > { %s13_s14 = sadd.s32 1, %s392_s14   ;;  %s458_s12 = smov %s388_s13 }
  0x92   : > { %p10_p5 = scmp.ge.s32.totalorder %s13_s14, 4   ;;  %s459_s13 = smov %s461_s15 }
  0x94   :  { %12 = sbr.rel (!%p10_p5) target bundleno = 2 (0x2), region = 62 }

// kernel: downsampler_forward.2
= control target key start
LH: loop header
LB: loop body
LE: loop exit
PB: predicated region body
PF: predicated region fallthrough
CT: control target
= control target key end

     0   :  { %s932_s15 = smov 0   ;;  %s934_s16 = smov 0   ;;  %s1037_s0 = inlined_call_operand.vmem [shape: bf16[2,112,512], index: 0, kind: input, shape index: {}]   ;;  %s1038_s1 = inlined_call_operand.vmem [shape: bf16[16,112], index: 1, kind: input, shape index: {}]   ;;  %s1039_s2 = inlined_call_operand.vmem [shape: bf16[2,8,512], index: 2, kind: output, shape index: {0}]   ;;  %s1040_s3 = inlined_call_operand.vmem [shape: f32[2,1,8,1], index: 3, kind: output, shape index: {1}]   ;;  %s1041_s4 = inlined_call_operand.vmem [shape: f32[2,1,8,1], index: 4, kind: output, shape index: {2}]  }
   0x1   :  { %s936_s17 = smov 0  }
   0x2 LB: > { %s27_s18 = sadd.s32 1, %s901_s16  ;;  %p700_p0 = scmp.ge.s32.totalorder %s905_s17, 1  ;;  %s905_s17 = sphi %s936_s17, %s15_s17   ;;  %s901_s16 = sphi %s934_s16, %s1043_s16   ;;  %s897_s15 = sphi %s932_s15, %s1042_s15  }
   0x3   : > { %p29_p1 = scmp.ge.s32.totalorder %s27_s18, 2  ;;  %p192_p2 = scmp.lt.s32.totalorder %s905_s17, 3 }
   0x5   : > { %s1045_s18 = smov (%p29_p1, %s27_s18), 0  ;;  %p193_p3 = pnand %p700_p0, %p192_p2 }
   0x6   : > { %p241_p4 = scmp.lt.s32.totalorder (!%p193_p3), %s897_s15, 1 }
   0x7   : > { %196 = sbr.rel (%p193_p3) target bundleno = 308 (0x134), region = 28 }
   0xc   : > { %s1047_s15 = smov (!%p241_p4, %s897_s15), 1  ;;  %vm450_vm0 = vcmask 916480   ;;  %vm515_vm1 = vcmask 7168  }
   0xd   : > { %s858_s19 = smul.u32 224, %s1047_s15  ;;  %s828_s25 = sshll.u32 %s1047_s15, 4 }
   0xe   : > { %s258_s28 = scalar_lea.vmem %s1039_s2, %s828_s25  ;;  %s704_s29 = sshll.u32 %s1047_s15, 3 }
   0xf   : > { %s956_s22 = scalar_lea.vmem %s1037_s0, %s858_s19  ;;  %s266_s6 = scalar_lea.vmem %s1040_s3, %s704_s29 }
  0x10   : > { %v808_v0 = vld [vmem:[%s956_s22 + $0xc0] sm:$0xf]  ;;  %v856_v1 = vld [vmem:[%s956_s22 + $0xcc] sm:$0xf0]  ;;  %v854_v2 = vld [vmem:[%s956_s22 + $0xc4] sm:$0xf]  ;;  %s273_s9 = scalar_lea.vmem %s1041_s4, %s704_s29 }
  0x11   : > { %v809_v3 = vor.u32 %v856_v1, %v808_v0  ;;  %v810_v4 = vld [vmem:[%s956_s22 + $0xd0] sm:$0xf0]  ;;  %v816_v5 = vld [vmem:[%s956_s22 + $0xc8] sm:$0xf]  ;;  %v857_v6 = vld [vmem:[%s956_s22 + $0xd4] sm:$0xf0] }
  0x12   : > { %v813_v7 = vor.u32 %v854_v2, %v810_v4  ;;  %v817_v8 = vor.u32 %v857_v6, %v816_v5  ;;  %v855_v9 = vld [vmem:[%s956_s22 + $0xcc] sm:$0xf]  ;;  %v818_v10 = vld [vmem:[%s956_s22 + $0xd8] sm:$0xf0]  ;;  %v792_v11 = vld [vmem:[%s956_s22 + $0xa0] sm:$0xf] }
  0x13   : > { %455 = vmatpush.bf16.msra.mxu0 %v809_v3  ;;  %v821_v12 = vor.u32 %v855_v9, %v818_v10  ;;  %v852_v13 = vld [vmem:[%s956_s22 + $0xac] sm:$0xf0]  ;;  %v850_v14 = vld [vmem:[%s956_s22 + $0xa4] sm:$0xf]  ;;  %v794_v15 = vld [vmem:[%s956_s22 + $0xb0] sm:$0xf0] }
  0x14   : > { %468 = vmatpush.bf16.msra.mxu1 %v813_v7  ;;  %481 = vmatpush.bf16.msra.mxu2 %v817_v8  ;;  %v793_v16 = vor.u32 %v852_v13, %v792_v11  ;;  %v797_v17 = vor.u32 %v850_v14, %v794_v15  ;;  %v800_v18 = vld [vmem:[%s956_s22 + $0xa8] sm:$0xf]  ;;  %v853_v19 = vld [vmem:[%s956_s22 + $0xb4] sm:$0xf0]  ;;  %v851_v20 = vld [vmem:[%s956_s22 + $0xac] sm:$0xf] }
  0x15   : > { %494 = vmatpush.bf16.msra.mxu3 %v821_v12  ;;  %v801_v21 = vor.u32 %v853_v19, %v800_v18  ;;  %v802_v22 = vld [vmem:[%s956_s22 + $0xb8] sm:$0xf0]  ;;  %v776_v23 = vld [vmem:[%s956_s22 + $0x80] sm:$0xf]  ;;  %v848_v24 = vld [vmem:[%s956_s22 + $0x8c] sm:$0xf0] }
  0x16   : > { %v805_v25 = vor.u32 %v851_v20, %v802_v22  ;;  %v846_v26 = vld [vmem:[%s956_s22 + $0x84] sm:$0xf]  ;;  %v778_v27 = vld [vmem:[%s956_s22 + $0x90] sm:$0xf0]  ;;  %v784_v28 = vld [vmem:[%s956_s22 + $0x88] sm:$0xf]  ;;  %v777_v29 = vor.u32 %v848_v24, %v776_v23 }
  0x17   : > { %456 = vmatpush.bf16.msra.mxu0 %v793_v16  ;;  %v849_v30 = vld [vmem:[%s956_s22 + $0x94] sm:$0xf0]  ;;  %v847_v31 = vld [vmem:[%s956_s22 + $0x8c] sm:$0xf]  ;;  %v786_v32 = vld [vmem:[%s956_s22 + $0x98] sm:$0xf0]  ;;  %v781_v33 = vor.u32 %v846_v26, %v778_v27 }
  0x18   : > { %469 = vmatpush.bf16.msra.mxu1 %v797_v17  ;;  %482 = vmatpush.bf16.msra.mxu2 %v801_v21  ;;  %v785_v34 = vor.u32 %v849_v30, %v784_v28  ;;  %v760_v35 = vld [vmem:[%s956_s22 + $0x60] sm:$0xf]  ;;  %v844_v36 = vld [vmem:[%s956_s22 + $0x6c] sm:$0xf0]  ;;  %v842_v37 = vld [vmem:[%s956_s22 + $0x64] sm:$0xf]  ;;  %v789_v38 = vor.u32 %v847_v31, %v786_v32 }
  0x19   : > { %495 = vmatpush.bf16.msra.mxu3 %v805_v25  ;;  %v762_v39 = vld [vmem:[%s956_s22 + $0x70] sm:$0xf0]  ;;  %v768_v40 = vld [vmem:[%s956_s22 + $0x68] sm:$0xf]  ;;  %v845_v41 = vld [vmem:[%s956_s22 + $0x74] sm:$0xf0]  ;;  %v761_v44 = vor.u32 %v844_v36, %v760_v35 }
  0x1a   : > { %v843_v42 = vld [vmem:[%s956_s22 + $0x6c] sm:$0xf]  ;;  %v770_v43 = vld [vmem:[%s956_s22 + $0x78] sm:$0xf0]  ;;  %v765_v45 = vor.u32 %v842_v37, %v762_v39  ;;  %v769_v46 = vor.u32 %v845_v41, %v768_v40  ;;  %v744_v47 = vld [vmem:[%s956_s22 + $0x40] sm:$0xf] }
  0x1b   : > { %457 = vmatpush.bf16.msra.mxu0 %v777_v29  ;;  %v840_v48 = vld [vmem:[%s956_s22 + $0x4c] sm:$0xf0]  ;;  %v838_v49 = vld [vmem:[%s956_s22 + $0x44] sm:$0xf]  ;;  %v773_v50 = vor.u32 %v843_v42, %v770_v43  ;;  %v746_v51 = vld [vmem:[%s956_s22 + $0x50] sm:$0xf0] }
  0x1c   : > { %470 = vmatpush.bf16.msra.mxu1 %v781_v33  ;;  %483 = vmatpush.bf16.msra.mxu2 %v785_v34  ;;  %v752_v52 = vld [vmem:[%s956_s22 + $0x48] sm:$0xf]  ;;  %v841_v53 = vld [vmem:[%s956_s22 + $0x54] sm:$0xf0]  ;;  %v839_v54 = vld [vmem:[%s956_s22 + $0x4c] sm:$0xf]  ;;  %v745_v56 = vor.u32 %v840_v48, %v744_v47  ;;  %v749_v57 = vor.u32 %v838_v49, %v746_v51 }
  0x1d   : > { %496 = vmatpush.bf16.msra.mxu3 %v789_v38  ;;  %v754_v55 = vld [vmem:[%s956_s22 + $0x58] sm:$0xf0]  ;;  %v753_v58 = vor.u32 %v841_v53, %v752_v52  ;;  %v728_v59 = vld [vmem:[%s956_s22 + $0x20] sm:$0xf]  ;;  %v836_v60 = vld [vmem:[%s956_s22 + $0x2c] sm:$0xf0] }
  0x1e   : > { %v834_v61 = vld [vmem:[%s956_s22 + $0x24] sm:$0xf]  ;;  %v757_v62 = vor.u32 %v839_v54, %v754_v55  ;;  %v730_v63 = vld [vmem:[%s956_s22 + $0x30] sm:$0xf0]  ;;  %v736_v0 = vld [vmem:[%s956_s22 + $0x28] sm:$0xf]  ;;  %v729_v4 = vor.u32 %v836_v60, %v728_v59 }
  0x1f   : > { %458 = vmatpush.bf16.msra.mxu0 %v761_v44  ;;  %v837_v1 = vld [vmem:[%s956_s22 + $0x34] sm:$0xf0]  ;;  %v835_v2 = vld [vmem:[%s956_s22 + $0x2c] sm:$0xf]  ;;  %v738_v3 = vld [vmem:[%s956_s22 + $0x38] sm:$0xf0]  ;;  %v733_v5 = vor.u32 %v834_v61, %v730_v63 }
  0x20   : > { %471 = vmatpush.bf16.msra.mxu1 %v765_v45  ;;  %484 = vmatpush.bf16.msra.mxu2 %v769_v46  ;;  %v737_v6 = vor.u32 %v837_v1, %v736_v0  ;;  %v712_v7 = vld [vmem:[%s956_s22] sm:$0xf]  ;;  %v832_v8 = vld [vmem:[%s956_s22 + $0xc] sm:$0xf0]  ;;  %v830_v9 = vld [vmem:[%s956_s22 + $0x4] sm:$0xf]  ;;  %v741_v10 = vor.u32 %v835_v2, %v738_v3 }
  0x21   : > { %497 = vmatpush.bf16.msra.mxu3 %v773_v50  ;;  %v714_v11 = vld [vmem:[%s956_s22 + $0x10] sm:$0xf0]  ;;  %v720_v12 = vld [vmem:[%s956_s22 + $0x8] sm:$0xf]  ;;  %v833_v13 = vld [vmem:[%s956_s22 + $0x14] sm:$0xf0]  ;;  %v713_v16 = vor.u32 %v832_v8, %v712_v7 }
  0x22   : > { %v831_v14 = vld [vmem:[%s956_s22 + $0xc] sm:$0xf]  ;;  %v722_v15 = vld [vmem:[%s956_s22 + $0x18] sm:$0xf0]  ;;  %v717_v17 = vor.u32 %v830_v9, %v714_v11  ;;  %v721_v18 = vor.u32 %v833_v13, %v720_v12  ;;  %v829_v20 = vld [vmem:[%s1038_s1] sm:$0xff] }
  0x23   : > { %459 = vmatpush.bf16.msra.mxu0 %v745_v56  ;;  %v725_v19 = vor.u32 %v831_v14, %v722_v15 }
  0x24   : > { %472 = vmatpush.bf16.msra.mxu1 %v749_v57  ;;  %485 = vmatpush.bf16.msra.mxu2 %v753_v58 }
  0x25   : > { %498 = vmatpush.bf16.msra.mxu3 %v757_v62 }
  0x27   : > { %460 = vmatpush.bf16.msra.mxu0 %v729_v4 }
  0x28   : > { %473 = vmatpush.bf16.msra.mxu1 %v733_v5  ;;  %486 = vmatpush.bf16.msra.mxu2 %v737_v6 }
  0x29   : > { %499 = vmatpush.bf16.msra.mxu3 %v741_v10 }
  0x2b   : > { %461 = vmatpush.bf16.msra.mxu0 %v713_v16 }
  0x2c   : > { %474 = vmatpush.bf16.msra.mxu1 %v717_v17  ;;  %487 = vmatpush.bf16.msra.mxu2 %v721_v18 }
  0x2d   : > { %500 = vmatpush.bf16.msra.mxu3 %v725_v19 }
  0x2e   : > { %822 = vmatmul.msk.bf16.vlgmr.msra.gmra.mxu0 %vm450_vm0, %v829_v20 }
  0x2f   : > { %823 = vmatmul.msk.bf16.vlgmr.msra.gmra.mxu1 %vm450_vm0, %v829_v20  ;;  %824 = vmatmul.msk.bf16.vlgmr.msra.gmra.mxu2 %vm450_vm0, %v829_v20 }
  0x30   : > { %825 = vmatmul.msk.bf16.vlgmr.msra.gmra.mxu3 %vm450_vm0, %v829_v20 }
  0xab   : > { %v463_v21 = vpop.f32.mrf.mxu0 }
  0xac   : > { %v476_v22 = vpop.f32.mrf.mxu1  ;;  %v517_v25 = vmul.f32 %v463_v21, %v463_v21 }
  0xad   : > { %v506_v23 = vpack.c.bf16 %v476_v22, %v463_v21  ;;  %v510_v24 = vadd.f32 %v476_v22, %v463_v21  ;;  %v518_v26 = vmul.f32 %v476_v22, %v476_v22 }
  0xaf   : > { %508 = vst [vmem:[%s258_s28] sm:$0xff] %v506_v23  ;;  %v521_v35 = vadd.f32 %v518_v26, %v517_v25 }
  0xb2   : > { %v489_v27 = vpop.f32.mrf.mxu2 }
  0xb3   : > { %v502_v28 = vpop.f32.mrf.mxu3  ;;  %v465_v29 = vpop.f32.mrf.mxu0  ;;  %v511_v30 = vadd.f32 %v510_v24, %v489_v27  ;;  %v519_v33 = vmul.f32 %v489_v27, %v489_v27 }
  0xb4   : > { %v507_v31 = vpack.c.bf16 %v502_v28, %v489_v27  ;;  %v478_v32 = vpop.f32.mrf.mxu1  ;;  %v520_v36 = vmul.f32 %v502_v28, %v502_v28 }
  0xb5   : > { %v512_v34 = vadd.f32 %v511_v30, %v502_v28  ;;  %v522_v37 = vadd.f32 %v521_v35, %v519_v33 }
  0xb6   : > { %509 = vst [vmem:[%s258_s28 + $0x8] sm:$0xff] %v507_v31 }
  0xb7   : > { %513 = vadd.xlane.f32.xlu0 %v512_v34  ;;  %v523_v40 = vadd.f32 %v522_v37, %v520_v36 }
  0xba   : > { %v491_v38 = vpop.f32.mrf.mxu2 }
  0xbb   : > { %v504_v39 = vpop.f32.mrf.mxu3 }
  0xbf   : > { %524 = vadd.xlane.f32.xlu0 %v523_v40 }
 0x12a   : > { %v514_v41 = vpop.xlane.xlu0 %513 }
 0x12b   : > { %516 = vst.msk [vmem:[%s266_s6] sm:$0xff] %vm515_vm1, %v514_v41 }
 0x132   : > { %v525_v42 = vpop.xlane.xlu0 %524 }
 0x133   : > { %526 = vst.msk [vmem:[%s273_s9] sm:$0xff] %vm515_vm1, %v525_v42 }
 0x134 PF: > { %s15_s17 = sadd.s32 1, %s905_s17   ;;  %s1042_s15 = smov %s901_s16 }
 0x135   : > { %p12_p5 = scmp.ge.s32.totalorder %s15_s17, 4   ;;  %s1043_s16 = smov %s1045_s18 }
 0x137   :  { %14 = sbr.rel (!%p12_p5) target bundleno = 2 (0x2), region = 82 }

</bundles_post_ra>
